<compile_context>
chip_gen: v6e
topology: v6e:2x2x1
jax: 0.10.0
libtpu: 0.0.40
codegen_flags: <defaults>
</compile_context>

<pallas_src>
import jax
import jax.numpy as jnp
from jax.experimental import pallas as pl
from jax.experimental.pallas import tpu as pltpu

_EPS = 1e-5


def _layernorm_kernel(x_ref, w_ref, b_ref, o_ref):
    """Generic path: feature dim already lane-dense (>=128) or non-folding."""
    x = x_ref[...].astype(jnp.float32)
    mean = jnp.mean(x, axis=-1, keepdims=True)
    xc = x - mean
    var = jnp.mean(xc * xc, axis=-1, keepdims=True)
    inv = jax.lax.rsqrt(var + _EPS)          # EUP slot, effectively free
    w = w_ref[...].astype(jnp.float32)
    b = b_ref[...].astype(jnp.float32)
    o_ref[...] = (xc * inv * w + b).astype(o_ref.dtype)


def _layernorm_folded_kernel(x_ref, w_ref, b_ref, m_ref, o_ref):
    """Narrow-feature path: g = 128//ndim rows folded into the 128-lane dim.

    m_ref is a (width, width) block-diagonal matrix with 1/ndim entries, so
    x @ m broadcasts each segment's mean across its own ndim lanes.  The MXU is
    otherwise idle here (memory-bound kernel), and all loads/stores stay
    lane-dense (last dim == 128 -> unmasked vst).
    """
    x = x_ref[...].astype(jnp.float32)
    m = m_ref[...]
    mean = jnp.dot(x, m, precision=jax.lax.Precision.HIGHEST,
                   preferred_element_type=jnp.float32)
    xc = x - mean
    var = jnp.dot(xc * xc, m, precision=jax.lax.Precision.HIGHEST,
                  preferred_element_type=jnp.float32)
    inv = jax.lax.rsqrt(var + _EPS)
    w = w_ref[...].astype(jnp.float32)
    b = b_ref[...].astype(jnp.float32)
    o_ref[...] = (xc * inv * w + b).astype(o_ref.dtype)


def _pick_row_tile(rows, width, dtype):
    """Largest sublane-aligned row tile that fits a conservative VMEM budget."""
    itemsize = jnp.dtype(dtype).itemsize
    sublane = {1: 32, 2: 16, 4: 8}.get(itemsize, 8)
    # Conservative budget (safe under v7x's 64 MiB physical VMEM) covering
    # double-buffered input + output blocks and ~3 live f32 intermediates.
    budget = 40 * 1024 * 1024
    bytes_per_row = width * (itemsize * 2 * 2 + 4 * 3)
    max_tile = max(sublane, budget // max(bytes_per_row, 1))
    rows_rounded = pl.cdiv(max(rows, 1), sublane) * sublane
    tile = min(1024, max_tile, rows_rounded)
    tile = max(sublane, (tile // sublane) * sublane)
    return tile


def layer_norm_pallas(x, weight, bias=None, *, row_tile=None):
    """LayerNorm over the last dim of x. weight/bias have shape (ndim,)."""
    ndim = x.shape[-1]
    assert weight.shape == (ndim,)
    if bias is None:
        bias = jnp.zeros((ndim,), dtype=x.dtype)

    orig_shape = x.shape
    rows = 1
    for d in orig_shape[:-1]:
        rows *= d
    x2 = x.reshape(rows, ndim)

    # Fold g rows into the 128-lane dim when the feature dim is narrow so the
    # output slab is lane-dense (unmasked stores).
    fold = 128 // ndim if (ndim < 128 and 128 % ndim == 0) else 1
    # TODO(synk): ndim < 128 that does NOT divide 128 still takes the masked
    # generic path; a padded-segment repack would cover that case too.
    width = ndim * fold

    if fold > 1:
        rows_g = pl.cdiv(rows, fold) * fold
        if rows_g != rows:
            x2 = jnp.pad(x2, ((0, rows_g - rows), (0, 0)))
        x2 = x2.reshape(rows_g // fold, width)
    frows = x2.shape[0]

    if row_tile is None:
        row_tile = _pick_row_tile(frows, width, x.dtype)

    num_blocks = pl.cdiv(frows, row_tile)
    frows_padded = num_blocks * row_tile
    if frows_padded != frows:
        x2 = jnp.pad(x2, ((0, frows_padded - frows), (0, 0)))

    w2 = jnp.tile(weight.reshape(1, ndim), (1, fold))
    b2 = jnp.tile(bias.reshape(1, ndim), (1, fold))

    x_spec = pl.BlockSpec((row_tile, width), lambda i: (i, 0))
    wb_spec = pl.BlockSpec((1, width), lambda i: (0, 0))       # resident
    out_spec = pl.BlockSpec((row_tile, width), lambda i: (i, 0))
    compiler_params = pltpu.CompilerParams(
        dimension_semantics=("parallel",),
        vmem_limit_bytes=48 * 1024 * 1024,
    )
    out_shape = jax.ShapeDtypeStruct((frows_padded, width), x.dtype)

    if fold > 1:
        seg = jnp.arange(width) // ndim
        m = jnp.where(seg[:, None] == seg[None, :], 1.0 / ndim, 0.0)
        m = m.astype(jnp.float32)
        out = pl.pallas_call(
            _layernorm_folded_kernel,
            out_shape=out_shape,
            grid_spec=pltpu.PrefetchScalarGridSpec(
                num_scalar_prefetch=0,
                grid=(num_blocks,),
                in_specs=[
                    x_spec,
                    wb_spec,
                    wb_spec,
                    pl.BlockSpec((width, width), lambda i: (0, 0)),  # resident
                ],
                out_specs=out_spec,
            ),
            compiler_params=compiler_params,
        )(x2, w2, b2, m)
    else:
        out = pl.pallas_call(
            _layernorm_kernel,
            out_shape=out_shape,
            grid_spec=pltpu.PrefetchScalarGridSpec(
                num_scalar_prefetch=0,
                grid=(num_blocks,),
                in_specs=[x_spec, wb_spec, wb_spec],
                out_specs=out_spec,
            ),
            compiler_params=compiler_params,
        )(x2, w2, b2)

    if frows_padded != frows:
        out = out[:frows]
    if fold > 1:
        out = out.reshape(frows * fold, ndim)[:rows]
    return out.reshape(orig_shape)


def _ref_layernorm(x, weight, bias):
    mean = jnp.mean(x, axis=-1, keepdims=True)
    var = jnp.mean((x - mean) ** 2, axis=-1, keepdims=True)
    return (x - mean) * jax.lax.rsqrt(var + _EPS) * weight + bias


if __name__ == "__main__":
    key = jax.random.PRNGKey(0)
    batch, seq, hidden = 2, 8, 32  # ndim = hidden = 32 -> folded lane-dense path
    x = jax.random.normal(key, (batch, seq, hidden), dtype=jnp.float32)

    # Deterministic parameter init matching the module's __init__:
    # weight = ones(ndim), bias = zeros(ndim) (bias=True case).
    weight = jnp.ones((hidden,), dtype=jnp.float32)
    bias = jnp.zeros((hidden,), dtype=jnp.float32)

    y = jax.block_until_ready(layer_norm_pallas(x, weight, bias))
    assert jnp.allclose(y, _ref_layernorm(x, weight, bias), atol=1e-5, rtol=1e-5), \
        "mismatch vs reference (folded path)"

    # Non-divisible, larger row count -> exercises row padding on the folded path.
    x_big = jax.random.normal(key, (3, 37, hidden), dtype=jnp.float32)
    y_big = jax.block_until_ready(layer_norm_pallas(x_big, weight, bias))
    assert jnp.allclose(y_big, _ref_layernorm(x_big, weight, bias),
                        atol=1e-5, rtol=1e-5), "mismatch (padded folded path)"

    # Wide feature dim -> exercises the generic lane-reduce path.
    hid2 = 256
    x_wide = jax.random.normal(key, (2, 8, hid2), dtype=jnp.float32)
    w2 = jnp.ones((hid2,), dtype=jnp.float32)
    b2 = jnp.zeros((hid2,), dtype=jnp.float32)
    y_wide = jax.block_until_ready(layer_norm_pallas(x_wide, w2, b2))
    assert jnp.allclose(y_wide, _ref_layernorm(x_wide, w2, b2),
                        atol=1e-5, rtol=1e-5), "mismatch (generic path)"

    print("KERNEL_OK")
</pallas_src>

<mosaic_0001>
module attributes {stable_mosaic.version = 11 : i64} {
  func.func @_layernorm_folded_kernel(%arg0: i32, %arg1: memref<8x128xf32, #tpu.memory_space<vmem>>, %arg2: memref<1x128xf32, #tpu.memory_space<vmem>>, %arg3: memref<1x128xf32, #tpu.memory_space<vmem>>, %arg4: memref<128x128xf32, #tpu.memory_space<vmem>>, %arg5: memref<8x128xf32, #tpu.memory_space<vmem>>) attributes {dimension_semantics = [#tpu.dimension_semantics<parallel>], iteration_bounds = array<i64: 1>, scalar_prefetch = 0 : i64, scratch_operands = 0 : i64, tpu.core_type = #tpu.core_type<tc>, window_params = [{transform_indices = @transform_0, window_bounds = array<i64: 8, 128>}, {pipeline_mode = #tpu.pipeline_mode<synchronous>, transform_indices = @transform_1, window_bounds = array<i64: 1, 128>}, {pipeline_mode = #tpu.pipeline_mode<synchronous>, transform_indices = @transform_2, window_bounds = array<i64: 1, 128>}, {pipeline_mode = #tpu.pipeline_mode<synchronous>, transform_indices = @transform_3, window_bounds = array<i64: 128, 128>}, {transform_indices = @transform_4, window_bounds = array<i64: 8, 128>}]} {
    %c0 = arith.constant 0 : index
    %c0_0 = arith.constant 0 : index
    %0 = vector.load %arg1[%c0, %c0_0] : memref<8x128xf32, #tpu.memory_space<vmem>>, vector<8x128xf32>
    %c0_1 = arith.constant 0 : index
    %c0_2 = arith.constant 0 : index
    %1 = vector.load %arg4[%c0_1, %c0_2] : memref<128x128xf32, #tpu.memory_space<vmem>>, vector<128x128xf32>
    %cst = arith.constant dense<0.000000e+00> : vector<8x128xf32>
    %2 = tpu.matmul %0, %1, %cst {dimension_numbers = #tpu.dot_dimension_numbers<[1], [0], [0], [1], [0, 0, 1, 1], [], []>, precision = #tpu.contract_precision<fp32>} : vector<8x128xf32>, vector<128x128xf32>, vector<8x128xf32> -> vector<8x128xf32>
    %3 = arith.subf %0, %2 : vector<8x128xf32>
    %4 = arith.mulf %3, %3 : vector<8x128xf32>
    %cst_3 = arith.constant dense<0.000000e+00> : vector<8x128xf32>
    %5 = tpu.matmul %4, %1, %cst_3 {dimension_numbers = #tpu.dot_dimension_numbers<[1], [0], [0], [1], [0, 0, 1, 1], [], []>, precision = #tpu.contract_precision<fp32>} : vector<8x128xf32>, vector<128x128xf32>, vector<8x128xf32> -> vector<8x128xf32>
    %cst_4 = arith.constant 9.99999974E-6 : f32
    %6 = vector.broadcast %cst_4 : f32 to vector<8x128xf32>
    %7 = arith.addf %5, %6 : vector<8x128xf32>
    %8 = math.rsqrt %7 : vector<8x128xf32>
    %c0_5 = arith.constant 0 : index
    %c0_6 = arith.constant 0 : index
    %9 = vector.load %arg2[%c0_5, %c0_6] : memref<1x128xf32, #tpu.memory_space<vmem>>, vector<1x128xf32>
    %c0_7 = arith.constant 0 : index
    %c0_8 = arith.constant 0 : index
    %10 = vector.load %arg3[%c0_7, %c0_8] : memref<1x128xf32, #tpu.memory_space<vmem>>, vector<1x128xf32>
    %11 = arith.mulf %3, %8 : vector<8x128xf32>
    %12 = vector.broadcast %9 : vector<1x128xf32> to vector<8x128xf32>
    %13 = arith.mulf %11, %12 : vector<8x128xf32>
    %14 = vector.broadcast %10 : vector<1x128xf32> to vector<8x128xf32>
    %15 = arith.addf %13, %14 : vector<8x128xf32>
    %c0_9 = arith.constant 0 : index
    %c0_10 = arith.constant 0 : index
    %16 = vector.load %arg5[%c0_9, %c0_10] : memref<8x128xf32, #tpu.memory_space<vmem>>, vector<8x128xf32>
    tpu.vector_store %arg5[%c0_9, %c0_10], %15 {strides = array<i32>} : memref<8x128xf32, #tpu.memory_space<vmem>>, vector<8x128xf32>,
    return
  }
  func.func @transform_0(%arg0: i32) -> (i32, i32) {
    %c0_i32 = arith.constant 0 : i32
    %c0_i32_0 = arith.constant 0 : i32
    return %arg0, %c0_i32 : i32, i32
  }
  func.func @transform_1(%arg0: i32) -> (i32, i32) {
    %c0_i32 = arith.constant 0 : i32
    %c0_i32_0 = arith.constant 0 : i32
    %c0_i32_1 = arith.constant 0 : i32
    return %c0_i32, %c0_i32_0 : i32, i32
  }
  func.func @transform_2(%arg0: i32) -> (i32, i32) {
    %c0_i32 = arith.constant 0 : i32
    %c0_i32_0 = arith.constant 0 : i32
    %c0_i32_1 = arith.constant 0 : i32
    return %c0_i32, %c0_i32_0 : i32, i32
  }
  func.func @transform_3(%arg0: i32) -> (i32, i32) {
    %c0_i32 = arith.constant 0 : i32
    %c0_i32_0 = arith.constant 0 : i32
    %c0_i32_1 = arith.constant 0 : i32
    return %c0_i32, %c0_i32_0 : i32, i32
  }
  func.func @transform_4(%arg0: i32) -> (i32, i32) {
    %c0_i32 = arith.constant 0 : i32
    %c0_i32_0 = arith.constant 0 : i32
    return %arg0, %c0_i32 : i32, i32
  }
}

</mosaic_0001>

<bundles_post_ra>
// kernel: tpu_custom_call.1
= control target key start
LH: loop header
LB: loop body
LE: loop exit
PB: predicated region body
PF: predicated region fallthrough
CT: control target
= control target key end

     0   :  { %9 = vsyncpa [#allocation3], 0  ;;  %s2764_s0 = inlined_call_operand.hbm [shape: f32[8,128], index: 0, kind: input, shape index: {}]   ;;  %s2765_s1 = inlined_call_operand.vmem [shape: f32[1,128], index: 1, kind: input, shape index: {}]   ;;  %s2766_s2 = inlined_call_operand.vmem [shape: f32[1,128], index: 2, kind: input, shape index: {}]   ;;  %s2767_s3 = inlined_call_operand.hbm [shape: f32[128,128], index: 3, kind: input, shape index: {}]   ;;  %s2768_s4 = inlined_call_operand.hbm [shape: f32[8,128], index: 4, kind: output, shape index: {}]  }
   0x1   :  { %10 = vsyncpa [#allocation6], 0 }
   0x2   :  { %11 = vsyncpa [#allocation4], 0  ;;  %s2081_s15 = smov [#allocation2]   ;;  %s2082_s17 = smov [#allocation5]  }
   0x3   :  { %s18_s16 = sshll.u32 %s2081_s15, 4  ;;  %s31_s18 = sshll.u32 %s2082_s17, 4  ;;  %s19_s16 = int_to_ptr.vmem [resolvable:$true] %s18_s16  ;;  %s32_s18 = int_to_ptr.vmem [resolvable:$true] %s31_s18 }
   0x4   :  { %s2023_s19 = scalar_lea.vmem %s19_s16, 128  ;;  %p2028_p1 = scmp.lt.s32.totalorder %s19_s16, %s19_s16 }
   0x5   :  { %p2024_p0 = scmp.ne.s32.totalorder %s19_s16, %s2023_s19  ;;  %p2029_p2 = scmp.lt.s32.totalorder %s2023_s19, %s2023_s19 }
   0x7   :  { %p2030_p3 = por %p2029_p2, %p2028_p1 }
   0x9   :  { %p2031_p4 = pnand %p2030_p3, %p2024_p0 }
   0xb   :  { %2034 = shalt.err (!%p2031_p4)
}
   0xc   :  { %21 = dma.hbm_to_vmem [thread:$0]  %s2764_s0, 128, %s19_s16, [#allocation3]  }
   0xd   :  { %s2043_s22 = scalar_lea.vmem %s32_s18, 2048  ;;  %p2048_p6 = scmp.lt.s32.totalorder %s32_s18, %s32_s18 }
   0xe   :  { %p2044_p5 = scmp.ne.s32.totalorder %s32_s18, %s2043_s22  ;;  %p2049_p7 = scmp.lt.s32.totalorder %s2043_s22, %s2043_s22 }
  0x10   :  { %p2050_p8 = por %p2049_p7, %p2048_p6 }
  0x12   :  { %p2051_p9 = pnand %p2050_p8, %p2044_p5 }
  0x14   :  { %2054 = shalt.err (!%p2051_p9)
}
  0x15   :  { %s2083_s23 = smov 128   ;;  %s2084_s24 = smov 8  }
  0x16   :  { %37 = dma.hbm_to_vmem [thread:$0]  %s2767_s3, 2048, %s32_s18, [#allocation6], %s2083_s23, %s2083_s23, %s2084_s24  }
  0x17   :  { %2075 = dma.done.wait [#allocation3], 128  }
  0x18   :  { %2076 = vsyncadd [#allocation3], 4294967168 }
  0x19   :  { %2077 = dma.done.wait [#allocation6], 2048  }
  0x1a   :  { %2078 = vsyncadd [#allocation6], 4294965248  ;;  %v2085_v0 = vmov 0.0   ;;  %vm2086_vm0 = vmmov 0   ;;  %v60_v1 = vld [vmem:[#allocation5 + $0x78] sm:$0xff]  ;;  %v59_v2 = vld [vmem:[#allocation5 + $0x70] sm:$0xff] }
  0x1b   :  { %1586 = vmatprep.subr.mxu0 %v2085_v0  ;;  %1621 = vmatprep.subr.mxu1 %v2085_v0  ;;  %v58_v3 = vld [vmem:[#allocation5 + $0x68] sm:$0xff]  ;;  %v2125_v4 = vand.u32 4294901760, %v60_v1  ;;  %v2127_v5 = vand.u32 4294901760, %v59_v2  ;;  %v57_v7 = vld [vmem:[#allocation5 + $0x60] sm:$0xff]  ;;  %v56_v8 = vld [vmem:[#allocation5 + $0x58] sm:$0xff]  ;;  %s2087_s29 = smov [#allocation7]  }
  0x1c   :  { %1618 = vmatprep.mubr.msk.f32.mxu0 %vm2086_vm0, %v2085_v0  ;;  %1653 = vmatprep.mubr.msk.f32.mxu1 %vm2086_vm0, %v2085_v0  ;;  %v2129_v6 = vand.u32 4294901760, %v58_v3  ;;  %v55_v9 = vld [vmem:[#allocation5 + $0x50] sm:$0xff]  ;;  %v2131_v10 = vand.u32 4294901760, %v57_v7  ;;  %v2133_v11 = vand.u32 4294901760, %v56_v8  ;;  %v54_v13 = vld [vmem:[#allocation5 + $0x48] sm:$0xff]  ;;  %v53_v14 = vld [vmem:[#allocation5 + $0x40] sm:$0xff] }
  0x1d   :  { %v2135_v12 = vand.u32 4294901760, %v55_v9  ;;  %1587 = vmatpush3.msra.mxu0 %v2125_v4  ;;  %v2139_v15 = vsub.f32 %v60_v1, %v2125_v4  ;;  %v2142_v16 = vsub.f32 %v59_v2, %v2127_v5  ;;  %v2144_v17 = vand.u32 4294901760, %v54_v13  ;;  %v52_v19 = vld [vmem:[#allocation5 + $0x38] sm:$0xff]  ;;  %v51_v26 = vld [vmem:[#allocation5 + $0x30] sm:$0xff]  ;;  %v50_v36 = vld [vmem:[#allocation5 + $0x28] sm:$0xff]  ;;  %s1370_s30 = sshll.u32 %s2087_s29, 4  ;;  %s1371_s30 = int_to_ptr.vmem [resolvable:$true] %s1370_s30 }
  0x1e   :  { %v2147_v18 = vsub.f32 %v58_v3, %v2129_v6  ;;  %1588 = vmatprep.subr.mxu0 %v2085_v0  ;;  %v2151_v20 = vsub.f32 %v57_v7, %v2131_v10  ;;  %v2154_v21 = vsub.f32 %v56_v8, %v2133_v11  ;;  %v2166_v25 = vand.u32 4294901760, %v53_v14  ;;  %v49_v41 = vld [vmem:[#allocation5 + $0x20] sm:$0xff]  ;;  %v48_v49 = vld [vmem:[#allocation5 + $0x18] sm:$0xff]  ;;  %v47_v54 = vld [vmem:[#allocation5 + $0x10] sm:$0xff]  ;;  %s2055_s5 = scalar_lea.vmem %s1371_s30, 128  ;;  %p2060_p11 = scmp.lt.s32.totalorder %s1371_s30, %s1371_s30 }
  0x1f   :  { %1589 = vmatpush3.msra.mxu0 %v2127_v5  ;;  %v2158_v22 = vand.u32 4294901760, %v2139_v15  ;;  %v2161_v23 = vand.u32 4294901760, %v2142_v16  ;;  %v2172_v28 = vand.u32 4294901760, %v52_v19  ;;  %v2178_v30 = vsub.f32 %v55_v9, %v2135_v12  ;;  %v2225_v50 = vld [vmem:[#allocation2] sm:$0xff]  ;;  %v46_v60 = vld [vmem:[#allocation5 + $0x8] sm:$0xff]  ;;  %v45_v7 = vld [vmem:[#allocation5] sm:$0xff]  ;;  %p2056_p10 = scmp.ne.s32.totalorder %s1371_s30, %s2055_s5  ;;  %p2061_p12 = scmp.lt.s32.totalorder %s2055_s5, %s2055_s5 }
  0x20   :  { %v2164_v24 = vand.u32 4294901760, %v2147_v18  ;;  %1590 = vmatprep.subr.mxu0 %v2085_v0  ;;  %v2170_v27 = vand.u32 4294901760, %v2151_v20  ;;  %v2175_v29 = vand.u32 4294901760, %v2154_v21  ;;  %v2188_v34 = vsub.f32 %v54_v13, %v2144_v17  ;;  %2781 = vst [vmem:[#allocation11_spill] sm:$0xff] %v2225_v50 }
  0x21   :  { %1591 = vmatpush3.msra.mxu0 %v2129_v6  ;;  %v156_v31 = vsub.f32 %v2139_v15, %v2158_v22  ;;  %v163_v32 = vsub.f32 %v2142_v16, %v2161_v23  ;;  %v2191_v35 = vand.u32 4294901760, %v51_v26  ;;  %v2201_v40 = vand.u32 4294901760, %v2178_v30  ;;  %p2062_p13 = por %p2061_p12, %p2060_p11 }
  0x22   :  { %v170_v33 = vsub.f32 %v2147_v18, %v2164_v24  ;;  %1592 = vmatprep.subr.mxu0 %v2085_v0  ;;  %v177_v39 = vsub.f32 %v2151_v20, %v2170_v27  ;;  %v184_v42 = vsub.f32 %v2154_v21, %v2175_v29  ;;  %v2207_v43 = vsub.f32 %v53_v14, %v2166_v25 }
  0x23   :  { %1593 = vmatpush3.msra.mxu0 %v2131_v10  ;;  %v2194_v37 = vand.u32 4294901760, %v156_v31  ;;  %v2196_v38 = vand.u32 4294901760, %v163_v32  ;;  %v2213_v45 = vand.u32 4294901760, %v50_v36  ;;  %v2216_v46 = vand.u32 4294901760, %v2188_v34  ;;  %p2063_p0 = pnand %p2062_p13, %p2056_p10 }
  0x24   :  { %1594 = vmatprep.subr.mxu0 %v2085_v0  ;;  %v2211_v44 = vand.u32 4294901760, %v170_v33  ;;  %v2219_v47 = vsub.f32 %v52_v19, %v2172_v28  ;;  %v2223_v48 = vand.u32 4294901760, %v49_v41  ;;  %v2229_v51 = vand.u32 4294901760, %v177_v39 }
  0x25   :  { %1595 = vmatpush3.msra.mxu0 %v2133_v11  ;;  %1622 = vmatpush3.msra.mxu1 %v2194_v37  ;;  %v191_v52 = vsub.f32 %v2178_v30, %v2201_v40  ;;  %v2234_v53 = vand.u32 4294901760, %v2207_v43  ;;  %v2237_v55 = vsub.f32 %v51_v26, %v2191_v35  ;;  %v2241_v56 = vand.u32 4294901760, %v184_v42 }
  0x26   :  { %1596 = vmatprep.subr.mxu0 %v2085_v0  ;;  %1623 = vmatprep.subr.mxu1 %v2085_v0  ;;  %2782 = vst [vmem:[#allocation12_spill] sm:$0xff] %v2229_v51  ;;  %v2244_v57 = vand.u32 4294901760, %v2219_v47  ;;  %v198_v58 = vsub.f32 %v2188_v34, %v2216_v46  ;;  %v2250_v59 = vand.u32 4294901760, %v48_v49  ;;  %v2253_v61 = vsub.f32 %v50_v36, %v2213_v45 }
  0x27   :  { %1597 = vmatpush3.msra.mxu0 %v2135_v12  ;;  %1624 = vmatpush3.msra.mxu1 %v2196_v38  ;;  %2783 = vst [vmem:[#allocation13_spill] sm:$0xff] %v2241_v56  ;;  %v2256_v62 = vand.u32 4294901760, %v2225_v50  ;;  %v2260_v63 = vand.u32 4294901760, %v47_v54  ;;  %v2264_v1 = vand.u32 4294901760, %v191_v52  ;;  %v205_v2 = vsub.f32 %v2207_v43, %v2234_v53 }
  0x28   :  { %1598 = vmatprep.subr.mxu0 %v2085_v0  ;;  %1625 = vmatprep.subr.mxu1 %v2085_v0  ;;  %v2269_v3 = vand.u32 4294901760, %v2237_v55  ;;  %v2272_v8 = vsub.f32 %v49_v41, %v2223_v48  ;;  %v212_v9 = vsub.f32 %v2219_v47, %v2244_v57  ;;  %v2278_v13 = vand.u32 4294901760, %v46_v60 }
  0x29   :  { %1599 = vmatpush3.msra.mxu0 %v2144_v17  ;;  %1626 = vmatpush3.msra.mxu1 %v2211_v44  ;;  %2784 = vst [vmem:[#allocation14_spill] sm:$0xff] %v2264_v1  ;;  %v2282_v14 = vand.u32 4294901760, %v198_v58  ;;  %v2285_v19 = vand.u32 4294901760, %v2253_v61  ;;  %v2289_v26 = vsub.f32 %v2225_v50, %v2256_v62  ;;  %v2292_v31 = vsub.f32 %v48_v49, %v2250_v59 }
  0x2a   :  { %1600 = vmatprep.subr.mxu0 %v2085_v0  ;;  %1627 = vmatprep.subr.mxu1 %v2085_v0  ;;  %v2296_v32 = vand.u32 4294901760, %v45_v7  ;;  %v2300_v33 = vand.u32 4294901760, %v205_v2  ;;  %v219_v36 = vsub.f32 %v2237_v55, %v2269_v3  ;;  %v2305_v39 = vand.u32 4294901760, %v2272_v8 }
  0x2b   :  { %1601 = vmatpush3.msra.mxu0 %v2166_v25  ;;  %1628 = vmatpush3.msra.mxu1 %v2229_v51  ;;  %2785 = vst [vmem:[#allocation15_spill] sm:$0xff] %v2282_v14  ;;  %v2308_v41 = vsub.f32 %v47_v54, %v2260_v63  ;;  %v2312_v42 = vand.u32 4294901760, %v212_v9  ;;  %v226_v49 = vsub.f32 %v2253_v61, %v2285_v19  ;;  %v2320_v58 = vand.u32 4294901760, %v2292_v31 }
  0x2c   :  { %1602 = vmatprep.subr.mxu0 %v2085_v0  ;;  %1629 = vmatprep.subr.mxu1 %v2085_v0  ;;  %2786 = vst [vmem:[#allocation16_spill] sm:$0xff] %v2300_v33  ;;  %v2323_v54 = vsub.f32 %v46_v60, %v2278_v13  ;;  %v2329_v2 = vand.u32 4294901760, %v219_v36  ;;  %v233_v9 = vsub.f32 %v2272_v8, %v2305_v39  ;;  %v2791_v36 = vand.u32 4294901760, %v2289_v26 }
  0x2d   :  { %1603 = vmatpush3.msra.mxu0 %v2172_v28  ;;  %1630 = vmatpush3.msra.mxu1 %v2241_v56  ;;  %2787 = vst [vmem:[#allocation17_spill] sm:$0xff] %v2312_v42  ;;  %2788 = vst [vmem:[#allocation18_spill] sm:$0xff] %v2320_v58  ;;  %v2334_v52 = vand.u32 4294901760, %v2308_v41  ;;  %v2337_v50 = vsub.f32 %v45_v7, %v2296_v32  ;;  %v2343_v60 = vand.u32 4294901760, %v226_v49 }
  0x2e   :  { %1604 = vmatprep.subr.mxu0 %v2085_v0  ;;  %1631 = vmatprep.subr.mxu1 %v2085_v0  ;;  %2789 = vst [vmem:[#allocation19_spill] sm:$0xff] %v2329_v2  ;;  %v2351_v7 = vand.u32 4294901760, %v2323_v54  ;;  %v2357_v49 = vand.u32 4294901760, %v233_v9 }
  0x2f   :  { %1605 = vmatpush3.msra.mxu0 %v2191_v35  ;;  %1632 = vmatpush3.msra.mxu1 %v2264_v1  ;;  %2790 = vst [vmem:[#allocation20_spill] sm:$0xff] %v2334_v52 }
  0x30   :  { %1606 = vmatprep.subr.mxu0 %v2085_v0  ;;  %1633 = vmatprep.subr.mxu1 %v2085_v0  ;;  %2792 = vst [vmem:[#allocation21_spill] sm:$0xff] %v2351_v7  ;;  %v254_v9 = vsub.f32 %v2323_v54, %v2351_v7 }
  0x31   :  { %1607 = vmatpush3.msra.mxu0 %v2213_v45  ;;  %1634 = vmatpush3.msra.mxu1 %v2282_v14  ;;  %v240_v14 = vsub.f32 %v2292_v31, %v2320_v58 }
  0x32   :  { %1608 = vmatprep.subr.mxu0 %v2085_v0  ;;  %1635 = vmatprep.subr.mxu1 %v2085_v0 }
  0x33   :  { %1609 = vmatpush3.msra.mxu0 %v2223_v48  ;;  %1636 = vmatpush3.msra.mxu1 %v2300_v33  ;;  %v145_v33 = vsub.f32 %v2289_v26, %v2791_v36  ;;  %v2362_v36 = vand.u32 4294901760, %v2337_v50  ;;  %v2368_v56 = vand.u32 4294901760, %v240_v14  ;;  %v2383_v14 = vand.u32 4294901760, %v254_v9 }
  0x34   :  { %1610 = vmatprep.subr.mxu0 %v2085_v0  ;;  %1637 = vmatprep.subr.mxu1 %v2085_v0 }
  0x35   :  { %1611 = vmatpush3.msra.mxu0 %v2250_v59  ;;  %1638 = vmatpush3.msra.mxu1 %v2312_v42  ;;  %v247_v42 = vsub.f32 %v2308_v41, %v2334_v52  ;;  %2793 = vst [vmem:[#allocation22_spill] sm:$0xff] %v2362_v36  ;;  %v146_v1 = vand.u32 4294901760, %v145_v33  ;;  %v261_v51 = vsub.f32 %v2337_v50, %v2362_v36 }
  0x36   :  { %1612 = vmatprep.subr.mxu0 %v2085_v0  ;;  %1639 = vmatprep.subr.mxu1 %v2085_v0 }
  0x37   :  { %1613 = vmatpush3.msra.mxu0 %v2260_v63  ;;  %1640 = vmatpush3.msra.mxu1 %v2329_v2  ;;  %v2376_v2 = vand.u32 4294901760, %v247_v42  ;;  %v2389_v33 = vand.u32 4294901760, %v261_v51  ;;  %v2794_v51 = vand.u32 4294901760, %v2289_v26  ;;  %v2801_v42 = vld [vmem:[#allocation19_spill] sm:$0xff] }
  0x38   :  { %1614 = vmatprep.subr.mxu0 %v2085_v0  ;;  %1641 = vmatprep.subr.mxu1 %v2085_v0 }
  0x39   :  { %1615 = vmatpush3.msra.mxu0 %v2278_v13  ;;  %1642 = vmatpush3.msra.mxu1 %v2343_v60 }
  0x3a   :  { %1616 = vmatprep.subr.mxu0 %v2085_v0  ;;  %1643 = vmatprep.subr.mxu1 %v2085_v0 }
  0x3b   :  { %1617 = vmatpush3.msra.mxu0 %v2296_v32  ;;  %1644 = vmatpush3.msra.mxu1 %v2357_v49 }
  0x3c   :  { %1645 = vmatprep.subr.mxu1 %v2085_v0  ;;  %1656 = vmatprep.subr.mxu0 %v2085_v0 }
  0x3d   :  { %1619 = vmatmul.mubr.f32.vlgmr.msra.gmra.mxu0 %v146_v1  ;;  %1646 = vmatpush3.msra.mxu1 %v2368_v56  ;;  %v2799_v1 = vld [vmem:[#allocation16_spill] sm:$0xff] }
  0x3e   :  { %1657 = vmatpush3.msra.mxu0 %v2139_v15  ;;  %1647 = vmatprep.subr.mxu1 %v2085_v0 }
  0x3f   :  { %1658 = vmatprep.subr.mxu0 %v2085_v0  ;;  %1648 = vmatpush3.msra.mxu1 %v2376_v2 }
  0x40   :  { %1659 = vmatpush3.msra.mxu0 %v2142_v16  ;;  %1649 = vmatprep.subr.mxu1 %v2085_v0 }
  0x41   :  { %1660 = vmatprep.subr.mxu0 %v2085_v0  ;;  %1650 = vmatpush3.msra.mxu1 %v2383_v14 }
  0x42   :  { %1661 = vmatpush3.msra.mxu0 %v2147_v18  ;;  %1651 = vmatprep.subr.mxu1 %v2085_v0 }
  0x43   :  { %1662 = vmatprep.subr.mxu0 %v2085_v0  ;;  %1652 = vmatpush3.msra.mxu1 %v2389_v33 }
  0x44   :  { %1663 = vmatpush3.msra.mxu0 %v2151_v20  ;;  %1654 = vmatmul.mubr.f32.vlgmr.msra.gmra.mxu1 %v2256_v62 }
  0x45   :  { %1664 = vmatprep.subr.mxu0 %v2085_v0  ;;  %1691 = vmatprep.subr.mxu1 %v2085_v0 }
  0x46   :  { %1665 = vmatpush3.msra.mxu0 %v2154_v21  ;;  %1692 = vmatpush3.msra.mxu1 %v2125_v4 }
  0x47   :  { %1666 = vmatprep.subr.mxu0 %v2085_v0  ;;  %1693 = vmatprep.subr.mxu1 %v2085_v0 }
  0x48   :  { %1667 = vmatpush3.msra.mxu0 %v2178_v30  ;;  %1694 = vmatpush3.msra.mxu1 %v2127_v5 }
  0x49   :  { %1668 = vmatprep.subr.mxu0 %v2085_v0  ;;  %1695 = vmatprep.subr.mxu1 %v2085_v0 }
  0x4a   :  { %1669 = vmatpush3.msra.mxu0 %v2188_v34  ;;  %1696 = vmatpush3.msra.mxu1 %v2129_v6 }
  0x4b   :  { %1670 = vmatprep.subr.mxu0 %v2085_v0  ;;  %1697 = vmatprep.subr.mxu1 %v2085_v0 }
  0x4c   :  { %1671 = vmatpush3.msra.mxu0 %v2207_v43  ;;  %1698 = vmatpush3.msra.mxu1 %v2131_v10 }
  0x4d   :  { %1672 = vmatprep.subr.mxu0 %v2085_v0  ;;  %1699 = vmatprep.subr.mxu1 %v2085_v0 }
  0x4e   :  { %1673 = vmatpush3.msra.mxu0 %v2219_v47  ;;  %1700 = vmatpush3.msra.mxu1 %v2133_v11 }
  0x4f   :  { %1674 = vmatprep.subr.mxu0 %v2085_v0  ;;  %1701 = vmatprep.subr.mxu1 %v2085_v0 }
  0x50   :  { %1675 = vmatpush3.msra.mxu0 %v2237_v55  ;;  %1702 = vmatpush3.msra.mxu1 %v2135_v12 }
  0x51   :  { %1676 = vmatprep.subr.mxu0 %v2085_v0  ;;  %1703 = vmatprep.subr.mxu1 %v2085_v0 }
  0x52   :  { %1677 = vmatpush3.msra.mxu0 %v2253_v61  ;;  %1704 = vmatpush3.msra.mxu1 %v2144_v17 }
  0x53   :  { %1678 = vmatprep.subr.mxu0 %v2085_v0  ;;  %1705 = vmatprep.subr.mxu1 %v2085_v0 }
  0x54   :  { %1679 = vmatpush3.msra.mxu0 %v2272_v8  ;;  %1706 = vmatpush3.msra.mxu1 %v2166_v25 }
  0x55   :  { %1680 = vmatprep.subr.mxu0 %v2085_v0  ;;  %1707 = vmatprep.subr.mxu1 %v2085_v0 }
  0x56   :  { %1681 = vmatpush3.msra.mxu0 %v2292_v31  ;;  %1708 = vmatpush3.msra.mxu1 %v2172_v28 }
  0x57   :  { %1682 = vmatprep.subr.mxu0 %v2085_v0  ;;  %1709 = vmatprep.subr.mxu1 %v2085_v0 }
  0x58   :  { %1683 = vmatpush3.msra.mxu0 %v2308_v41  ;;  %1710 = vmatpush3.msra.mxu1 %v2191_v35 }
  0x59   :  { %1684 = vmatprep.subr.mxu0 %v2085_v0  ;;  %1711 = vmatprep.subr.mxu1 %v2085_v0 }
  0x5a   :  { %1685 = vmatpush3.msra.mxu0 %v2323_v54  ;;  %1712 = vmatpush3.msra.mxu1 %v2213_v45 }
  0x5b   :  { %1686 = vmatprep.subr.mxu0 %v2085_v0  ;;  %1713 = vmatprep.subr.mxu1 %v2085_v0 }
  0x5c   :  { %1687 = vmatpush3.msra.mxu0 %v2337_v50  ;;  %1688 = vmatprep.mubr.msk.f32.mxu0 %vm2086_vm0, %v2085_v0 }
  0x5d   :  { %1714 = vmatpush3.msra.mxu1 %v2223_v48  ;;  %1689 = vmatmul.mubr.f32.vlgmr.msra.gmra.mxu0 %v2289_v26  ;;  %v2800_v26 = vld [vmem:[#allocation17_spill] sm:$0xff] }
  0x5e   :  { %1715 = vmatprep.subr.mxu1 %v2085_v0  ;;  %1726 = vmatprep.subr.mxu0 %v2085_v0 }
  0x5f   :  { %1716 = vmatpush3.msra.mxu1 %v2250_v59  ;;  %1727 = vmatpush3.msra.mxu0 %v2158_v22 }
  0x60   :  { %1717 = vmatprep.subr.mxu1 %v2085_v0  ;;  %1728 = vmatprep.subr.mxu0 %v2085_v0 }
  0x61   :  { %1718 = vmatpush3.msra.mxu1 %v2260_v63  ;;  %1729 = vmatpush3.msra.mxu0 %v2161_v23 }
  0x62   :  { %1719 = vmatprep.subr.mxu1 %v2085_v0  ;;  %1730 = vmatprep.subr.mxu0 %v2085_v0 }
  0x63   :  { %1720 = vmatpush3.msra.mxu1 %v2278_v13  ;;  %1731 = vmatpush3.msra.mxu0 %v2164_v24 }
  0x64   :  { %1721 = vmatprep.subr.mxu1 %v2085_v0  ;;  %1732 = vmatprep.subr.mxu0 %v2085_v0 }
  0x65   :  { %1722 = vmatpush3.msra.mxu1 %v2296_v32  ;;  %1723 = vmatprep.mubr.msk.f32.mxu1 %vm2086_vm0, %v2085_v0 }
  0x66   :  { %1733 = vmatpush3.msra.mxu0 %v2170_v27  ;;  %1724 = vmatmul.mubr.f32.vlgmr.msra.gmra.mxu1 %v2794_v51 }
  0x67   :  { %1734 = vmatprep.subr.mxu0 %v2085_v0  ;;  %1761 = vmatprep.subr.mxu1 %v2085_v0 }
  0x68   :  { %1735 = vmatpush3.msra.mxu0 %v2175_v29  ;;  %1762 = vmatpush3.msra.mxu1 %v2125_v4 }
  0x69   :  { %1736 = vmatprep.subr.mxu0 %v2085_v0  ;;  %1763 = vmatprep.subr.mxu1 %v2085_v0 }
  0x6a   :  { %1737 = vmatpush3.msra.mxu0 %v2201_v40  ;;  %1764 = vmatpush3.msra.mxu1 %v2127_v5 }
  0x6b   :  { %1738 = vmatprep.subr.mxu0 %v2085_v0  ;;  %1765 = vmatprep.subr.mxu1 %v2085_v0 }
  0x6c   :  { %1739 = vmatpush3.msra.mxu0 %v2216_v46  ;;  %1766 = vmatpush3.msra.mxu1 %v2129_v6 }
  0x6d   :  { %1740 = vmatprep.subr.mxu0 %v2085_v0  ;;  %1767 = vmatprep.subr.mxu1 %v2085_v0 }
  0x6e   :  { %1741 = vmatpush3.msra.mxu0 %v2234_v53  ;;  %1768 = vmatpush3.msra.mxu1 %v2131_v10 }
  0x6f   :  { %1742 = vmatprep.subr.mxu0 %v2085_v0  ;;  %1769 = vmatprep.subr.mxu1 %v2085_v0 }
  0x70   :  { %1743 = vmatpush3.msra.mxu0 %v2244_v57  ;;  %1770 = vmatpush3.msra.mxu1 %v2133_v11 }
  0x71   :  { %1744 = vmatprep.subr.mxu0 %v2085_v0  ;;  %1771 = vmatprep.subr.mxu1 %v2085_v0 }
  0x72   :  { %1745 = vmatpush3.msra.mxu0 %v2269_v3  ;;  %1772 = vmatpush3.msra.mxu1 %v2135_v12 }
  0x73   :  { %1746 = vmatprep.subr.mxu0 %v2085_v0  ;;  %1773 = vmatprep.subr.mxu1 %v2085_v0 }
  0x74   :  { %1747 = vmatpush3.msra.mxu0 %v2285_v19  ;;  %1774 = vmatpush3.msra.mxu1 %v2144_v17 }
  0x75   :  { %1748 = vmatprep.subr.mxu0 %v2085_v0  ;;  %1775 = vmatprep.subr.mxu1 %v2085_v0 }
  0x76   :  { %1749 = vmatpush3.msra.mxu0 %v2305_v39  ;;  %1776 = vmatpush3.msra.mxu1 %v2166_v25 }
  0x77   :  { %1750 = vmatprep.subr.mxu0 %v2085_v0  ;;  %1777 = vmatprep.subr.mxu1 %v2085_v0 }
  0x78   :  { %1751 = vmatpush3.msra.mxu0 %v2320_v58  ;;  %1778 = vmatpush3.msra.mxu1 %v2172_v28 }
  0x79   :  { %1752 = vmatprep.subr.mxu0 %v2085_v0  ;;  %1779 = vmatprep.subr.mxu1 %v2085_v0 }
  0x7a   :  { %1753 = vmatpush3.msra.mxu0 %v2334_v52  ;;  %1780 = vmatpush3.msra.mxu1 %v2191_v35 }
  0x7b   :  { %1754 = vmatprep.subr.mxu0 %v2085_v0  ;;  %1781 = vmatprep.subr.mxu1 %v2085_v0 }
  0x7c   :  { %1755 = vmatpush3.msra.mxu0 %v2351_v7  ;;  %1782 = vmatpush3.msra.mxu1 %v2213_v45 }
  0x7d   :  { %1756 = vmatprep.subr.mxu0 %v2085_v0  ;;  %1783 = vmatprep.subr.mxu1 %v2085_v0 }
  0x7e   :  { %1757 = vmatpush3.msra.mxu0 %v2362_v36  ;;  %1758 = vmatprep.mubr.msk.f32.mxu0 %vm2086_vm0, %v2085_v0 }
  0x7f   :  { %1784 = vmatpush3.msra.mxu1 %v2223_v48  ;;  %1759 = vmatmul.mubr.f32.vlgmr.msra.gmra.mxu0 %v2256_v62 }
  0x80   :  { %1785 = vmatprep.subr.mxu1 %v2085_v0  ;;  %1793 = vmatprep.mubr.msk.f32.mxu1 %vm2086_vm0, %v2085_v0 }
  0x81   :  { %1786 = vmatpush3.msra.mxu1 %v2250_v59  ;;  %1796 = vmatprep.subr.mxu0 %v2085_v0 }
  0x82   :  { %1787 = vmatprep.subr.mxu1 %v2085_v0  ;;  %1797 = vmatpush3.msra.mxu0 %v2125_v4 }
  0x83   :  { %1788 = vmatpush3.msra.mxu1 %v2260_v63  ;;  %1798 = vmatprep.subr.mxu0 %v2085_v0 }
  0x84   :  { %1789 = vmatprep.subr.mxu1 %v2085_v0  ;;  %1799 = vmatpush3.msra.mxu0 %v2127_v5 }
  0x85   :  { %1790 = vmatpush3.msra.mxu1 %v2278_v13  ;;  %1800 = vmatprep.subr.mxu0 %v2085_v0 }
  0x86   :  { %1791 = vmatprep.subr.mxu1 %v2085_v0  ;;  %1801 = vmatpush3.msra.mxu0 %v2129_v6 }
  0x87   :  { %1792 = vmatpush3.msra.mxu1 %v2296_v32  ;;  %1802 = vmatprep.subr.mxu0 %v2085_v0 }
  0x88   :  { %1794 = vmatmul.mubr.f32.vlgmr.msra.gmra.mxu1 %v2256_v62  ;;  %1831 = vmatprep.subr.mxu1 %v2085_v0  ;;  %v2798_v62 = vld [vmem:[#allocation15_spill] sm:$0xff] }
  0x89   :  { %1832 = vmatpush3.msra.mxu1 %v2194_v37  ;;  %1803 = vmatpush3.msra.mxu0 %v2131_v10  ;;  %v2795_v37 = vld [vmem:[#allocation12_spill] sm:$0xff] }
  0x8a   :  { %1833 = vmatprep.subr.mxu1 %v2085_v0  ;;  %1804 = vmatprep.subr.mxu0 %v2085_v0 }
  0x8b   :  { %1834 = vmatpush3.msra.mxu1 %v2196_v38  ;;  %1805 = vmatpush3.msra.mxu0 %v2133_v11  ;;  %v2796_v38 = vld [vmem:[#allocation13_spill] sm:$0xff] }
  0x8c   :  { %1835 = vmatprep.subr.mxu1 %v2085_v0  ;;  %1806 = vmatprep.subr.mxu0 %v2085_v0 }
  0x8d   :  { %1836 = vmatpush3.msra.mxu1 %v2211_v44  ;;  %1807 = vmatpush3.msra.mxu0 %v2135_v12  ;;  %v2797_v44 = vld [vmem:[#allocation14_spill] sm:$0xff] }
  0x8e   :  { %1837 = vmatprep.subr.mxu1 %v2085_v0  ;;  %1808 = vmatprep.subr.mxu0 %v2085_v0 }
  0x8f   :  { %1838 = vmatpush3.msra.mxu1 %v2795_v37  ;;  %1809 = vmatpush3.msra.mxu0 %v2144_v17 }
  0x90   :  { %1839 = vmatprep.subr.mxu1 %v2085_v0  ;;  %1810 = vmatprep.subr.mxu0 %v2085_v0 }
  0x91   :  { %1840 = vmatpush3.msra.mxu1 %v2796_v38  ;;  %1811 = vmatpush3.msra.mxu0 %v2166_v25 }
  0x92   :  { %1841 = vmatprep.subr.mxu1 %v2085_v0  ;;  %1812 = vmatprep.subr.mxu0 %v2085_v0 }
  0x93   :  { %1842 = vmatpush3.msra.mxu1 %v2797_v44  ;;  %1813 = vmatpush3.msra.mxu0 %v2172_v28 }
  0x94   :  { %1843 = vmatprep.subr.mxu1 %v2085_v0  ;;  %1814 = vmatprep.subr.mxu0 %v2085_v0 }
  0x95   :  { %1844 = vmatpush3.msra.mxu1 %v2798_v62  ;;  %1815 = vmatpush3.msra.mxu0 %v2191_v35 }
  0x96   :  { %1845 = vmatprep.subr.mxu1 %v2085_v0  ;;  %1816 = vmatprep.subr.mxu0 %v2085_v0 }
  0x97   :  { %1846 = vmatpush3.msra.mxu1 %v2799_v1  ;;  %1817 = vmatpush3.msra.mxu0 %v2213_v45 }
  0x98   :  { %1847 = vmatprep.subr.mxu1 %v2085_v0  ;;  %1818 = vmatprep.subr.mxu0 %v2085_v0 }
  0x99   :  { %1848 = vmatpush3.msra.mxu1 %v2800_v26  ;;  %1819 = vmatpush3.msra.mxu0 %v2223_v48 }
  0x9a   :  { %1849 = vmatprep.subr.mxu1 %v2085_v0  ;;  %1820 = vmatprep.subr.mxu0 %v2085_v0 }
  0x9b   :  { %1850 = vmatpush3.msra.mxu1 %v2801_v42  ;;  %1863 = vmatprep.mubr.msk.f32.mxu1 %vm2086_vm0, %v2085_v0 }
  0x9c   :  { %1851 = vmatprep.subr.mxu1 %v2085_v0  ;;  %1821 = vmatpush3.msra.mxu0 %v2250_v59 }
  0x9d   :  { %1852 = vmatpush3.msra.mxu1 %v2343_v60  ;;  %1822 = vmatprep.subr.mxu0 %v2085_v0 }
  0x9e   :  { %1853 = vmatprep.subr.mxu1 %v2085_v0  ;;  %1823 = vmatpush3.msra.mxu0 %v2260_v63 }
  0x9f   :  { %1854 = vmatpush3.msra.mxu1 %v2357_v49  ;;  %1824 = vmatprep.subr.mxu0 %v2085_v0 }
  0xa0   :  { %1855 = vmatprep.subr.mxu1 %v2085_v0  ;;  %1825 = vmatpush3.msra.mxu0 %v2278_v13 }
  0xa1   :  { %1856 = vmatpush3.msra.mxu1 %v2368_v56  ;;  %1826 = vmatprep.subr.mxu0 %v2085_v0 }
  0xa2   :  { %1857 = vmatprep.subr.mxu1 %v2085_v0  ;;  %1827 = vmatpush3.msra.mxu0 %v2296_v32 }
  0xa3   :  { %1858 = vmatpush3.msra.mxu1 %v2376_v2  ;;  %1828 = vmatprep.mubr.msk.f32.mxu0 %vm2086_vm0, %v2085_v0 }
  0xa4   :  { %1859 = vmatprep.subr.mxu1 %v2085_v0  ;;  %1866 = vmatprep.subr.mxu0 %v2085_v0 }
  0xa5   :  { %1860 = vmatpush3.msra.mxu1 %v2383_v14 }
  0xa6   :  { %1861 = vmatprep.subr.mxu1 %v2085_v0 }
  0xa7   :  { %1862 = vmatpush3.msra.mxu1 %v2389_v33  ;;  %v2802_v33 = vld [vmem:[#allocation11_spill] sm:$0xff] }
  0xa8   :  { %1901 = vmatprep.subr.mxu1 %v2085_v0 }
  0xfd   :  { %v148_v56 = vpop.f32.mrf.mxu0 }
  0xff   :  { %v1620_v60 = vpop.f32.mrf.mxu0 }
 0x104   :  { %v299_v49 = vpop.f32.mrf.mxu1 }
 0x105   :  { %v300_v62 = vadd.f32 %v299_v49, %v148_v56 }
 0x106   :  { %v1655_v9 = vpop.f32.mrf.mxu1 }
 0x11d   :  { %v403_v2 = vpop.f32.mrf.mxu0 }
 0x11e   :  { %v404_v26 = vadd.f32 %v403_v2, %v300_v62 }
 0x11f   :  { %v1690_v51 = vpop.f32.mrf.mxu0 }
 0x126   :  { %v492_v37 = vpop.f32.mrf.mxu1 }
 0x127   :  { %v493_v42 = vadd.f32 %v492_v37, %v404_v26 }
 0x128   :  { %v1725_v38 = vpop.f32.mrf.mxu1 }
 0x13f   :  { %v611_v44 = vpop.f32.mrf.mxu0 }
 0x140   :  { %v612_v14 = vadd.f32 %v611_v44, %v493_v42 }
 0x141   :  { %v1760_v1 = vpop.f32.mrf.mxu0 }
 0x148   :  { %v698_v36 = vpop.f32.mrf.mxu1 }
 0x149   :  { %v699_v7 = vadd.f32 %v698_v36, %v612_v14 }
 0x14a   :  { %v1795_v52 = vpop.f32.mrf.mxu1 }
 0x14b   :  { %v2605_v58 = vsub.f32 %v2802_v33, %v699_v7 }
 0x14d   :  { %v703_v60 = vmul.f32 %v2605_v58, %v2605_v58 }
 0x14f   :  { %v2609_v9 = vand.u32 4294901760, %v703_v60 }
 0x151   :  { %v2612_v51 = vsub.f32 %v703_v60, %v2609_v9  ;;  %1864 = vmatmul.mubr.f32.vlgmr.msra.gmra.mxu1 %v2609_v9 }
 0x152   :  { %1902 = vmatpush3.msra.mxu1 %v2125_v4  ;;  %1933 = vmatprep.mubr.msk.f32.mxu1 %vm2086_vm0, %v2085_v0 }
 0x153   :  { %1903 = vmatprep.subr.mxu1 %v2085_v0  ;;  %v787_v52 = vand.u32 4294901760, %v2612_v51 }
 0x154   :  { %1904 = vmatpush3.msra.mxu1 %v2127_v5 }
 0x155   :  { %1905 = vmatprep.subr.mxu1 %v2085_v0  ;;  %v788_v7 = vsub.f32 %v2612_v51, %v787_v52 }
 0x156   :  { %1906 = vmatpush3.msra.mxu1 %v2129_v6 }
 0x157   :  { %1907 = vmatprep.subr.mxu1 %v2085_v0  ;;  %v789_v36 = vand.u32 4294901760, %v788_v7 }
 0x158   :  { %1908 = vmatpush3.msra.mxu1 %v2131_v10 }
 0x159   :  { %1909 = vmatprep.subr.mxu1 %v2085_v0  ;;  %1829 = vmatmul.mubr.f32.vlgmr.msra.gmra.mxu0 %v789_v36 }
 0x15a   :  { %1867 = vmatpush3.msra.mxu0 %v2139_v15  ;;  %1910 = vmatpush3.msra.mxu1 %v2133_v11 }
 0x15b   :  { %1868 = vmatprep.subr.mxu0 %v2085_v0  ;;  %1911 = vmatprep.subr.mxu1 %v2085_v0 }
 0x15c   :  { %1869 = vmatpush3.msra.mxu0 %v2142_v16  ;;  %1912 = vmatpush3.msra.mxu1 %v2135_v12 }
 0x15d   :  { %1870 = vmatprep.subr.mxu0 %v2085_v0  ;;  %1913 = vmatprep.subr.mxu1 %v2085_v0 }
 0x15e   :  { %1871 = vmatpush3.msra.mxu0 %v2147_v18  ;;  %1914 = vmatpush3.msra.mxu1 %v2144_v17 }
 0x15f   :  { %1872 = vmatprep.subr.mxu0 %v2085_v0  ;;  %1915 = vmatprep.subr.mxu1 %v2085_v0 }
 0x160   :  { %1873 = vmatpush3.msra.mxu0 %v2151_v20  ;;  %1916 = vmatpush3.msra.mxu1 %v2166_v25 }
 0x161   :  { %1874 = vmatprep.subr.mxu0 %v2085_v0  ;;  %1917 = vmatprep.subr.mxu1 %v2085_v0 }
 0x162   :  { %1875 = vmatpush3.msra.mxu0 %v2154_v21  ;;  %1918 = vmatpush3.msra.mxu1 %v2172_v28 }
 0x163   :  { %1876 = vmatprep.subr.mxu0 %v2085_v0  ;;  %1919 = vmatprep.subr.mxu1 %v2085_v0 }
 0x164   :  { %1877 = vmatpush3.msra.mxu0 %v2178_v30  ;;  %1920 = vmatpush3.msra.mxu1 %v2191_v35 }
 0x165   :  { %1878 = vmatprep.subr.mxu0 %v2085_v0  ;;  %1921 = vmatprep.subr.mxu1 %v2085_v0 }
 0x166   :  { %1879 = vmatpush3.msra.mxu0 %v2188_v34  ;;  %1922 = vmatpush3.msra.mxu1 %v2213_v45 }
 0x167   :  { %1880 = vmatprep.subr.mxu0 %v2085_v0  ;;  %1923 = vmatprep.subr.mxu1 %v2085_v0 }
 0x168   :  { %1881 = vmatpush3.msra.mxu0 %v2207_v43  ;;  %1924 = vmatpush3.msra.mxu1 %v2223_v48 }
 0x169   :  { %1882 = vmatprep.subr.mxu0 %v2085_v0  ;;  %1925 = vmatprep.subr.mxu1 %v2085_v0 }
 0x16a   :  { %1883 = vmatpush3.msra.mxu0 %v2219_v47  ;;  %1926 = vmatpush3.msra.mxu1 %v2250_v59 }
 0x16b   :  { %1884 = vmatprep.subr.mxu0 %v2085_v0  ;;  %1927 = vmatprep.subr.mxu1 %v2085_v0 }
 0x16c   :  { %1885 = vmatpush3.msra.mxu0 %v2237_v55  ;;  %1928 = vmatpush3.msra.mxu1 %v2260_v63 }
 0x16d   :  { %1886 = vmatprep.subr.mxu0 %v2085_v0  ;;  %1929 = vmatprep.subr.mxu1 %v2085_v0 }
 0x16e   :  { %1887 = vmatpush3.msra.mxu0 %v2253_v61  ;;  %1930 = vmatpush3.msra.mxu1 %v2278_v13 }
 0x16f   :  { %1888 = vmatprep.subr.mxu0 %v2085_v0  ;;  %1931 = vmatprep.subr.mxu1 %v2085_v0 }
 0x170   :  { %1889 = vmatpush3.msra.mxu0 %v2272_v8  ;;  %1932 = vmatpush3.msra.mxu1 %v2296_v32 }
 0x171   :  { %1890 = vmatprep.subr.mxu0 %v2085_v0  ;;  %1934 = vmatmul.mubr.f32.vlgmr.msra.gmra.mxu1 %v787_v52 }
 0x172   :  { %1971 = vmatprep.subr.mxu1 %v2085_v0  ;;  %1891 = vmatpush3.msra.mxu0 %v2292_v31 }
 0x173   :  { %1972 = vmatpush3.msra.mxu1 %v2125_v4  ;;  %1892 = vmatprep.subr.mxu0 %v2085_v0  ;;  %v2803_v4 = vld [vmem:[#allocation18_spill] sm:$0xff] }
 0x174   :  { %1973 = vmatprep.subr.mxu1 %v2085_v0  ;;  %1893 = vmatpush3.msra.mxu0 %v2308_v41 }
 0x175   :  { %1974 = vmatpush3.msra.mxu1 %v2127_v5  ;;  %1894 = vmatprep.subr.mxu0 %v2085_v0  ;;  %v2804_v5 = vld [vmem:[#allocation20_spill] sm:$0xff] }
 0x176   :  { %1975 = vmatprep.subr.mxu1 %v2085_v0  ;;  %1895 = vmatpush3.msra.mxu0 %v2323_v54 }
 0x177   :  { %1976 = vmatpush3.msra.mxu1 %v2129_v6  ;;  %1896 = vmatprep.subr.mxu0 %v2085_v0  ;;  %v2805_v6 = vld [vmem:[#allocation21_spill] sm:$0xff] }
 0x178   :  { %1977 = vmatprep.subr.mxu1 %v2085_v0  ;;  %1897 = vmatpush3.msra.mxu0 %v2337_v50 }
 0x179   :  { %1898 = vmatprep.mubr.msk.f32.mxu0 %vm2086_vm0, %v2085_v0  ;;  %1978 = vmatpush3.msra.mxu1 %v2131_v10  ;;  %v2806_v10 = vld [vmem:[#allocation22_spill] sm:$0xff] }
 0x17a   :  { %1899 = vmatmul.mubr.f32.vlgmr.msra.gmra.mxu0 %v2612_v51  ;;  %1936 = vmatprep.subr.mxu0 %v2085_v0 }
 0x17b   :  { %1979 = vmatprep.subr.mxu1 %v2085_v0  ;;  %1937 = vmatpush3.msra.mxu0 %v2158_v22 }
 0x17c   :  { %1980 = vmatpush3.msra.mxu1 %v2133_v11  ;;  %1938 = vmatprep.subr.mxu0 %v2085_v0 }
 0x17d   :  { %1981 = vmatprep.subr.mxu1 %v2085_v0  ;;  %1939 = vmatpush3.msra.mxu0 %v2161_v23 }
 0x17e   :  { %1982 = vmatpush3.msra.mxu1 %v2135_v12  ;;  %1940 = vmatprep.subr.mxu0 %v2085_v0 }
 0x17f   :  { %1983 = vmatprep.subr.mxu1 %v2085_v0  ;;  %1941 = vmatpush3.msra.mxu0 %v2164_v24 }
 0x180   :  { %1984 = vmatpush3.msra.mxu1 %v2144_v17  ;;  %1942 = vmatprep.subr.mxu0 %v2085_v0 }
 0x181   :  { %1985 = vmatprep.subr.mxu1 %v2085_v0  ;;  %1943 = vmatpush3.msra.mxu0 %v2170_v27 }
 0x182   :  { %1986 = vmatpush3.msra.mxu1 %v2166_v25  ;;  %1944 = vmatprep.subr.mxu0 %v2085_v0 }
 0x183   :  { %1987 = vmatprep.subr.mxu1 %v2085_v0  ;;  %1945 = vmatpush3.msra.mxu0 %v2175_v29 }
 0x184   :  { %1988 = vmatpush3.msra.mxu1 %v2172_v28  ;;  %1946 = vmatprep.subr.mxu0 %v2085_v0 }
 0x185   :  { %1989 = vmatprep.subr.mxu1 %v2085_v0  ;;  %1947 = vmatpush3.msra.mxu0 %v2201_v40  ;;  %v1380_v40 = vld [vmem:[%s2765_s1] ss:$0 sm:$0xff] }
 0x186   :  { %1990 = vmatpush3.msra.mxu1 %v2191_v35  ;;  %1948 = vmatprep.subr.mxu0 %v2085_v0 }
 0x187   :  { %1991 = vmatprep.subr.mxu1 %v2085_v0  ;;  %1949 = vmatpush3.msra.mxu0 %v2216_v46 }
 0x188   :  { %1992 = vmatpush3.msra.mxu1 %v2213_v45  ;;  %1950 = vmatprep.subr.mxu0 %v2085_v0  ;;  %v1381_v45 = vld [vmem:[%s2766_s2] ss:$0 sm:$0xff] }
 0x189   :  { %1993 = vmatprep.subr.mxu1 %v2085_v0  ;;  %1951 = vmatpush3.msra.mxu0 %v2234_v53 }
 0x18a   :  { %1994 = vmatpush3.msra.mxu1 %v2223_v48  ;;  %1952 = vmatprep.subr.mxu0 %v2085_v0 }
 0x18b   :  { %1995 = vmatprep.subr.mxu1 %v2085_v0  ;;  %1953 = vmatpush3.msra.mxu0 %v2244_v57 }
 0x18c   :  { %1996 = vmatpush3.msra.mxu1 %v2250_v59  ;;  %1954 = vmatprep.subr.mxu0 %v2085_v0 }
 0x18d   :  { %1997 = vmatprep.subr.mxu1 %v2085_v0  ;;  %1955 = vmatpush3.msra.mxu0 %v2269_v3 }
 0x18e   :  { %1998 = vmatpush3.msra.mxu1 %v2260_v63  ;;  %1956 = vmatprep.subr.mxu0 %v2085_v0 }
 0x18f   :  { %1999 = vmatprep.subr.mxu1 %v2085_v0  ;;  %1957 = vmatpush3.msra.mxu0 %v2285_v19 }
 0x190   :  { %2000 = vmatpush3.msra.mxu1 %v2278_v13  ;;  %1958 = vmatprep.subr.mxu0 %v2085_v0 }
 0x191   :  { %2001 = vmatprep.subr.mxu1 %v2085_v0  ;;  %1959 = vmatpush3.msra.mxu0 %v2305_v39 }
 0x192   :  { %2002 = vmatpush3.msra.mxu1 %v2296_v32  ;;  %2003 = vmatprep.mubr.msk.f32.mxu1 %vm2086_vm0, %v2085_v0 }
 0x193   :  { %1960 = vmatprep.subr.mxu0 %v2085_v0  ;;  %2004 = vmatmul.mubr.f32.vlgmr.msra.gmra.mxu1 %v2609_v9 }
 0x194   :  { %1961 = vmatpush3.msra.mxu0 %v2803_v4  ;;  %1968 = vmatprep.mubr.msk.f32.mxu0 %vm2086_vm0, %v2085_v0 }
 0x195   :  { %1962 = vmatprep.subr.mxu0 %v2085_v0 }
 0x196   :  { %1963 = vmatpush3.msra.mxu0 %v2804_v5 }
 0x197   :  { %1964 = vmatprep.subr.mxu0 %v2085_v0 }
 0x198   :  { %1965 = vmatpush3.msra.mxu0 %v2805_v6 }
 0x199   :  { %1966 = vmatprep.subr.mxu0 %v2085_v0 }
 0x19a   :  { %1967 = vmatpush3.msra.mxu0 %v2806_v10 }
 0x19b   :  { %1969 = vmatmul.mubr.f32.vlgmr.msra.gmra.mxu0 %v2609_v9 }
 0x211   :  { %v942_v11 = vpop.f32.mrf.mxu1 }
 0x213   :  { %v1865_v12 = vpop.f32.mrf.mxu1 }
 0x219   :  { %v791_v15 = vpop.f32.mrf.mxu0 }
 0x21a   :  { %v792_v22 = vadd.f32 1e-05, %v791_v15 }
 0x21b   :  { %v1830_v16 = vpop.f32.mrf.mxu0 }
 0x21c   :  { %v943_v24 = vadd.f32 %v942_v11, %v792_v22 }
 0x231   :  { %v1135_v17 = vpop.f32.mrf.mxu1 }
 0x233   :  { %v1935_v18 = vpop.f32.mrf.mxu1 }
 0x23a   :  { %v1046_v20 = vpop.f32.mrf.mxu0 }
 0x23b   :  { %v1047_v27 = vadd.f32 %v1046_v20, %v943_v24 }
 0x23c   :  { %v1900_v21 = vpop.f32.mrf.mxu0 }
 0x23d   :  { %v1136_v28 = vadd.f32 %v1135_v17, %v1047_v27 }
 0x253   :  { %v1341_v23 = vpop.f32.mrf.mxu1 }
 0x255   :  { %v2005_v25 = vpop.f32.mrf.mxu1 }
 0x25b   :  { %v1254_v29 = vpop.f32.mrf.mxu0 }
 0x25c   :  { %v1255_v0 = vadd.f32 %v1254_v29, %v1136_v28 }
 0x25d   :  { %v1970_v30 = vpop.f32.mrf.mxu0 }
 0x25e   :  { %v1342_v34 = vadd.f32 %v1341_v23, %v1255_v0 }
 0x260   :  { %2013 = vrsqrt.f32 %v1342_v34 }
 0x26d   :  { %v2014_v35 = vpop.eup %2013 }
 0x26e   :  { %v1348_v43 = vmul.f32 %v2014_v35, %v2605_v58 }
 0x270   :  { %v1355_v46 = vmul.f32 %v1380_v40, %v1348_v43 }
 0x272   :  { %v1362_v47 = vadd.f32 %v1381_v45, %v1355_v46 }
 0x274   :  { %1363 = vst [vmem:[#allocation7] sm:$0xff] %v1362_v47 }
 0x275   :  { %2066 = shalt.err (!%p2063_p0)
}
 0x276   :  { %1373 = dma.vmem_to_hbm [thread:$0]  %s1371_s30, 128, %s2768_s4, [#allocation4]  }
 0x277   :  { %2079 = dma.done.wait [#allocation4], 128  }
 0x278   :  { %2080 = vsyncadd [#allocation4], 4294967168 }
 0x279   :  { %1377 = vsyncpa [#allocation3], 1 }
 0x27a   :  { %1378 = vsyncpa [#allocation6], 1 }
 0x27b   :  { %1379 = vsyncpa [#allocation4], 1 }

</bundles_post_ra>
